<compile_context>
chip_gen: v5e
topology: v5e:2x2
jax: 0.10.0
libtpu: 0.0.40
codegen_flags: <defaults>
</compile_context>

<pallas_src>
import functools
import math

import jax
import jax.numpy as jnp
from jax.experimental import pallas as pl
from jax.experimental.pallas import tpu as pltpu

_LANE = 128


# ----------------------------------------------------------------------------
# Pallas kernel
# ----------------------------------------------------------------------------
def _posenc_kernel(x_ref, pe_ref, o_ref):
    # x_ref : (tile_b, tile_l) flattened (seq*d_model) slab of token_embedding
    # pe_ref: (1, tile_l)      matching slab of the sinusoidal table (resident
    #                          across the inner batch axis of the grid)
    # o_ref : (tile_b, tile_l) output slab (aliased with x's buffer)
    o_ref[...] = x_ref[...] + pe_ref[...]
    # TODO(synk): training-mode dropout would use pltpu.prng_seed +
    # pltpu.prng_random_bits here; eval mode is identity, so it is omitted.


# ----------------------------------------------------------------------------
# Buffer construction (matches the PyTorch registered buffer exactly)
# ----------------------------------------------------------------------------
def build_pos_embedding(d_model, max_len=5000, dtype=jnp.float32):
    den = jnp.exp(
        -jnp.arange(0, d_model, 2, dtype=dtype) * (math.log(10000.0) / d_model)
    )                                                    # (d_model//2,)
    pos = jnp.arange(0, max_len, dtype=dtype).reshape(max_len, 1)
    ang = pos * den                                      # (max_len, d_model//2)
    pe = jnp.zeros((max_len, d_model), dtype=dtype)
    pe = pe.at[:, 0::2].set(jnp.sin(ang))
    pe = pe.at[:, 1::2].set(jnp.cos(ang))
    return pe


# ----------------------------------------------------------------------------
# Tiling / VMEM plan (all static Python ints)
# ----------------------------------------------------------------------------
def _vmem_capacity_bytes():
    try:
        return int(pltpu.get_tpu_info().vmem_capacity_bytes)
    except Exception:
        return 64 << 20          # conservative fallback (v7x per-TC size)


def _plan(B, S, D, itemsize):
    L = S * D
    cap = _vmem_capacity_bytes()
    # Live-buffer budget: conservative fraction of physical VMEM, hard-capped
    # at 48 MiB so a v6e-tuned plan never overruns v7x's 64 MiB.
    budget = min(int(cap * 0.6), 48 << 20)
    # Live buffers: 2x double-buffered x + 2x out + small resident pe.
    per_block = max(budget // 5, _LANE * itemsize)
    max_elems = per_block // itemsize

    # Sublane packing: f32 -> 8 rows, bf16 -> 16, int8/fp8 -> 32.
    sub = 8 * max(1, 4 // itemsize)

    # Lane (flattened seq*d_model) tile: full row if it fits, else a 128-multiple.
    if L * itemsize <= per_block:
        tile_l = L
    else:
        tile_l = max(_LANE, (max_elems // _LANE) * _LANE)

    # Batch tile: as many rows as fit, sublane-aligned unless covering all of B.
    rows = max(1, max_elems // tile_l)
    if rows >= B:
        tile_b = B
    else:
        tile_b = min(B, max(sub, (rows // sub) * sub))

    # Keep >= 2 grid steps when possible so both v7x TensorCores get work
    # (near-zero cost on single-TC v5e/v6e).
    if pl.cdiv(B, tile_b) * pl.cdiv(L, tile_l) == 1:
        if B >= 2 * sub:
            tile_b = max(sub, (pl.cdiv(B, 2) // sub) * sub)
        elif tile_l >= 2 * _LANE:
            tile_l = max(_LANE, (pl.cdiv(tile_l, 2) // _LANE) * _LANE)

    # Explicit scoped-VMEM limit sized to the chosen blocks (with headroom).
    block_bytes = tile_b * tile_l * itemsize
    pe_bytes = tile_l * itemsize
    live = 4 * block_bytes + 2 * pe_bytes
    vmem_limit = int(min(max(2 * live + (4 << 20), 32 << 20), int(cap * 0.75)))
    return int(tile_b), int(tile_l), vmem_limit


# ----------------------------------------------------------------------------
# Wrapper
# ----------------------------------------------------------------------------
@functools.partial(jax.jit, static_argnums=(2, 3, 4))
def _posenc_call(token_embedding, pos_embedding, tile_b, tile_l, vmem_limit):
    B, S, D = token_embedding.shape
    L = S * D
    x2 = token_embedding.reshape(B, L)                     # free reshape
    # One-time tiny (S*D) slice/cast; keeps the in-kernel add dtype-clean and
    # halves pe DMA bytes for bf16 activations.
    pe = pos_embedding[:S, :].astype(token_embedding.dtype).reshape(1, L)

    nl = pl.cdiv(L, tile_l)
    nb = pl.cdiv(B, tile_b)

    out2 = pl.pallas_call(
        _posenc_kernel,
        out_shape=jax.ShapeDtypeStruct((B, L), token_embedding.dtype),
        grid=(nl, nb),                                     # batch innermost
        in_specs=[
            pl.BlockSpec((tile_b, tile_l), lambda l, b: (b, l)),
            # pe block index is constant over b -> stays resident in VMEM,
            # fetched exactly once per l-chunk instead of once per batch row.
            pl.BlockSpec((1, tile_l), lambda l, b: (0, l)),
        ],
        out_specs=pl.BlockSpec((tile_b, tile_l), lambda l, b: (b, l)),
        input_output_aliases={0: 0},                       # donate token_embedding
        compiler_params=pltpu.CompilerParams(
            dimension_semantics=("parallel", "parallel"),
            vmem_limit_bytes=vmem_limit,
        ),
    )(x2, pe)
    return out2.reshape(B, S, D)


def positional_encoding_forward(token_embedding, pos_embedding):
    """out = token_embedding + pos_embedding[:S, :]  (dropout = identity, eval)."""
    B, S, D = token_embedding.shape
    tile_b, tile_l, vmem_limit = _plan(B, S, D, token_embedding.dtype.itemsize)
    return _posenc_call(token_embedding, pos_embedding, tile_b, tile_l, vmem_limit)


# ----------------------------------------------------------------------------
if __name__ == "__main__":
    B, S, D_MODEL, MAX_LEN = 2, 8, 32, 64
    DROPOUT_P = 0.1  # identity at inference

    key = jax.random.PRNGKey(0)
    token_embedding = jax.random.normal(key, (B, S, D_MODEL), dtype=jnp.float32)
    pos_embedding = build_pos_embedding(D_MODEL, MAX_LEN)

    out = positional_encoding_forward(token_embedding, pos_embedding)
    out = jax.block_until_ready(out)

    # Reference check against plain JAX (same math as the PyTorch forward).
    ref = token_embedding + pos_embedding[:S, :][None, :, :]
    assert out.shape == (B, S, D_MODEL)
    assert out.dtype == token_embedding.dtype
    assert jnp.allclose(out, ref, atol=1e-6, rtol=1e-6)

    print("KERNEL_OK")
</pallas_src>

<mosaic_0001>
module attributes {stable_mosaic.version = 11 : i64} {
  func.func @_posenc_kernel(%arg0: i32, %arg1: i32, %arg2: memref<2x128xf32, #tpu.memory_space<vmem>>, %arg3: memref<1x128xf32, #tpu.memory_space<vmem>>, %arg4: memref<2x128xf32, #tpu.memory_space<vmem>>) attributes {dimension_semantics = [#tpu.dimension_semantics<parallel>, #tpu.dimension_semantics<parallel>], iteration_bounds = array<i64: 2, 1>, scalar_prefetch = 0 : i64, scratch_operands = 0 : i64, tpu.core_type = #tpu.core_type<tc>, window_params = [{transform_indices = @transform_0, window_bounds = array<i64: 2, 128>}, {transform_indices = @transform_1, window_bounds = array<i64: 1, 128>}, {transform_indices = @transform_2, window_bounds = array<i64: 2, 128>}]} {
    %c0 = arith.constant 0 : index
    %c0_0 = arith.constant 0 : index
    %0 = vector.load %arg2[%c0, %c0_0] : memref<2x128xf32, #tpu.memory_space<vmem>>, vector<2x128xf32>
    %c0_1 = arith.constant 0 : index
    %c0_2 = arith.constant 0 : index
    %1 = vector.load %arg3[%c0_1, %c0_2] : memref<1x128xf32, #tpu.memory_space<vmem>>, vector<1x128xf32>
    %2 = vector.broadcast %1 : vector<1x128xf32> to vector<2x128xf32>
    %3 = arith.addf %0, %2 : vector<2x128xf32>
    %c0_3 = arith.constant 0 : index
    %c0_4 = arith.constant 0 : index
    %4 = vector.load %arg4[%c0_3, %c0_4] : memref<2x128xf32, #tpu.memory_space<vmem>>, vector<2x128xf32>
    tpu.vector_store %arg4[%c0_3, %c0_4], %3 {strides = array<i32>} : memref<2x128xf32, #tpu.memory_space<vmem>>, vector<2x128xf32>,
    return
  }
  func.func @transform_0(%arg0: i32, %arg1: i32) -> (i32, i32) {
    %c0_i32 = arith.constant 0 : i32
    return %arg1, %arg0 : i32, i32
  }
  func.func @transform_1(%arg0: i32, %arg1: i32) -> (i32, i32) {
    %c0_i32 = arith.constant 0 : i32
    %c0_i32_0 = arith.constant 0 : i32
    return %c0_i32, %arg0 : i32, i32
  }
  func.func @transform_2(%arg0: i32, %arg1: i32) -> (i32, i32) {
    %c0_i32 = arith.constant 0 : i32
    return %arg1, %arg0 : i32, i32
  }
}

</mosaic_0001>

<bundles_post_ra>
// kernel: _posenc_call.1
= control target key start
LH: loop header
LB: loop body
LE: loop exit
PB: predicated region body
PF: predicated region fallthrough
CT: control target
= control target key end

     0   :  { %s361_s9 = smov 0   ;;  %s363_s10 = smov 0   ;;  %s380_s0 = inlined_call_operand.vmem [shape: f32[2,256], index: 0, kind: input, shape index: {}, may-alias: {0,2}]   ;;  %s381_s1 = inlined_call_operand.vmem [shape: f32[1,256], index: 1, kind: input, shape index: {}]   ;;  %s382_s2 = inlined_call_operand.vmem [shape: f32[2,256], index: 2, kind: output, shape index: {}, may-alias: {0,2}]  }
   0x1   :  { %s342_s11 = smov 0  }
   0x2 LB: > { %s24_s12 = sadd.s32 1, %s340_s10  ;;  %p292_p0 = scmp.ge.s32.totalorder %s344_s11, 1  ;;  %s344_s11 = sphi %s342_s11, %s12_s11   ;;  %s340_s10 = sphi %s363_s10, %s384_s10   ;;  %s336_s9 = sphi %s361_s9, %s383_s9  }
   0x3   : > { %p26_p1 = scmp.ge.s32.totalorder %s24_s12, 2  ;;  %p139_p2 = scmp.lt.s32.totalorder %s344_s11, 3 }
   0x5   : > { %s386_s12 = smov (%p26_p1, %s24_s12), 0  ;;  %p140_p3 = pnand %p292_p0, %p139_p2 }
   0x6   : > { %p172_p4 = scmp.lt.s32.totalorder (!%p140_p3), %s336_s9, 1 }
   0x7   : > { %143 = sbr.rel (%p140_p3) target bundleno = 19 (0x13), region = 28 }
   0xc   : > { %s388_s9 = smov (!%p172_p4, %s336_s9), 1 }
   0xd   : > { %s293_s13 = sshll.u32 %s388_s9, 1  ;;  %s180_s16 = scalar_lea.vmem %s381_s1, %s388_s9 }
   0xe   : > { %s177_s19 = scalar_lea.vmem %s380_s0, %s293_s13  ;;  %v321_v0 = vld [vmem:[%s180_s16] ss:$0 sm:$0xff]  ;;  %s188_s22 = scalar_lea.vmem %s382_s2, %s293_s13 }
   0xf   : > { %v189_v1 = vld [vmem:[%s177_s19] sm:$0x3] }
  0x10   : > { %v194_v2 = vadd.f32 %v321_v0, %v189_v1 }
  0x12   : > { %195 = vst [vmem:[%s188_s22] sm:$0x3] %v194_v2 }
  0x13 PF: > { %s12_s11 = sadd.s32 1, %s344_s11   ;;  %s383_s9 = smov %s340_s10 }
  0x14   : > { %p9_p5 = scmp.ge.s32.totalorder %s12_s11, 4   ;;  %s384_s10 = smov %s386_s12 }
  0x16   :  { %11 = sbr.rel (!%p9_p5) target bundleno = 2 (0x2), region = 61 }

</bundles_post_ra>
